<compile_context>
chip_gen: v7x
topology: tpu7x:2x2x1
jax: 0.10.0
libtpu: 0.0.40
codegen_flags: <defaults>
</compile_context>

<pallas_src>
import functools

import jax
import jax.numpy as jnp
import numpy as np
from jax.experimental import pallas as pl
from jax.experimental.pallas import tpu as pltpu


def _round_up(x: int, n: int) -> int:
    return -(-x // n) * n


def _make_ffn_kernel(drop_rate: float, block_m: int, block_h: int):
    """Fused FFN kernel body; `drop_rate` / tile sizes are static Python values."""
    keep_rate = 1.0 - drop_rate
    if drop_rate > 0.0:
        # Drop iff hash_bits < thr, i.e. with probability ~= drop_rate.
        # Edge case: drop_rate == 1.0 clamps to 2^32-1 and keeps elements whose
        # hash equals UINT32_MAX (~2^-32 probability) -- harmless in practice.
        thr = int(round(drop_rate * (1 << 32)))
        thr = max(0, min(thr, (1 << 32) - 1))
    else:
        thr = 0

    def kernel(seed_ref, x_ref, w1_ref, b1_ref, w2_ref, b2_ref, o_ref, acc_ref):
        k = pl.program_id(1)
        nk = pl.num_programs(1)

        @pl.when(k == 0)
        def _():
            acc_ref[...] = jnp.zeros_like(acc_ref)

        # ---- linear1 chunk: (block_m, block_h), f32 accumulation on MXU ----
        h = jnp.dot(x_ref[...], w1_ref[...], preferred_element_type=jnp.float32)
        h = h + b1_ref[...].astype(jnp.float32)

        # ---- dropout (inverted scaling), portable counter-based hash PRNG ----
        if drop_rate > 0.0:
            i = pl.program_id(0)
            rows = jax.lax.broadcasted_iota(jnp.int32, (block_m, block_h), 0)
            cols = jax.lax.broadcasted_iota(jnp.int32, (block_m, block_h), 1)
            rows = (rows + i * block_m).astype(jnp.uint32)
            cols = (cols + k * block_h).astype(jnp.uint32)
            v = (rows * jnp.uint32(0x9E3779B1)) ^ (cols * jnp.uint32(0x85EBCA6B))
            v = v + seed_ref[0].astype(jnp.uint32)
            # murmur3 fmix32 finalizer -> well-mixed uint32 bits
            v = v ^ (v >> 16)
            v = v * jnp.uint32(0x7FEB352D)
            v = v ^ (v >> 15)
            v = v * jnp.uint32(0x846CA68B)
            v = v ^ (v >> 16)
            keep = v >= jnp.uint32(thr)
            h = jnp.where(keep, h * jnp.float32(1.0 / keep_rate), jnp.float32(0.0))

        # ---- partial linear2: accumulate into the f32 VMEM scratch ----
        acc_ref[...] += jnp.dot(h.astype(w2_ref.dtype), w2_ref[...],
                                preferred_element_type=jnp.float32)

        # ---- finalize: + b2, ReLU (last op in the module), store ----
        @pl.when(k == nk - 1)
        def _():
            y = acc_ref[...] + b2_ref[...].astype(jnp.float32)
            o_ref[...] = jnp.maximum(y, jnp.float32(0.0)).astype(o_ref.dtype)

    return kernel


def positionwise_feed_forward(x, w1, b1, w2, b2, *, drop_rate=0.0, seed=0):
    """Fused FFN: relu(dropout(x @ w1 + b1) @ w2 + b2).

    x : (..., d_model)   w1 : (d_model, ffn_hidden)   b1 : (ffn_hidden,)
                          w2 : (ffn_hidden, d_model)   b2 : (d_model,)
    drop_rate == 0.0  -> eval mode (deterministic, matches the torch module
                         with dropout disabled, modulo bf16 MXU accumulation).
    """
    orig_shape = x.shape
    orig_dtype = x.dtype
    d_model = orig_shape[-1]
    ffn_hidden = w1.shape[-1]

    x2 = x.reshape(-1, d_model)
    m = x2.shape[0]

    # ---- tile sizing ----------------------------------------------------
    # Row tile: target 256 (fills the 256-wide MXU of v6e/v7x); small inputs
    # are split into >=2 tiles so v7x's two TensorCores both get work.
    m8 = _round_up(m, 8)
    if m8 <= 256:
        block_m = m8 // 2 if (m8 >= 16 and m8 % 16 == 0) else m8
    else:
        block_m = 256
    m_pad = _round_up(m, block_m)

    # Hidden tile: multiple of 128 lanes; 512 keeps the per-step footprint
    # well inside v7x's 64 MiB/TC while giving long MXU bursts.
    block_h = 512 if ffn_hidden > 512 else _round_up(ffn_hidden, 128)
    f_pad = _round_up(ffn_hidden, block_h)

    # Lane-dense model dim.
    d_pad = _round_up(d_model, 128)

    # ---- padding + dtype prep -------------------------------------------
    compute_dtype = jnp.bfloat16          # MXU has no native f32 mode anyway
    x2 = jnp.pad(x2, ((0, m_pad - m), (0, d_pad - d_model))).astype(compute_dtype)
    w1p = jnp.pad(w1, ((0, d_pad - d_model), (0, f_pad - ffn_hidden))).astype(compute_dtype)
    w2p = jnp.pad(w2, ((0, f_pad - ffn_hidden), (0, d_pad - d_model))).astype(compute_dtype)
    b1p = jnp.pad(b1.astype(jnp.float32), (0, f_pad - ffn_hidden)).reshape(1, f_pad)
    b2p = jnp.pad(b2.astype(jnp.float32), (0, d_pad - d_model)).reshape(1, d_pad)
    seed_arr = jnp.array([seed], dtype=jnp.int32)

    kernel = _make_ffn_kernel(float(drop_rate), block_m, block_h)

    n_m_tiles = m_pad // block_m
    n_h_tiles = f_pad // block_h

    # ---- cost estimate (real itemsizes, tiled weight access) -------------
    itm = jnp.dtype(compute_dtype).itemsize
    out_itm = jnp.dtype(orig_dtype).itemsize
    flops = 4 * m_pad * d_pad * f_pad
    bytes_accessed = (m_pad * d_pad * itm                       # x
                      + n_m_tiles * (d_pad * f_pad * itm        # W1 streamed per row tile
                                     + f_pad * d_pad * itm      # W2 streamed per row tile
                                     + f_pad * 4 + d_pad * 4)   # biases
                      + m_pad * d_pad * out_itm)                # output

    # ---- scoped VMEM budget from the actual tile footprint ---------------
    vmem_bytes = (2 * block_m * d_pad * itm        # x tile (double-buffered)
                  + 2 * d_pad * block_h * itm      # W1 tile
                  + 2 * block_h * d_pad * itm      # W2 tile
                  + 2 * block_h * 4 + 2 * d_pad * 4   # biases
                  + 2 * block_m * d_pad * out_itm  # output tile
                  + block_m * d_pad * 4)           # f32 accumulator scratch
    vmem_limit = int(min(max(int(vmem_bytes * 1.5) + (4 << 20), 32 << 20), 100 << 20))

    out = pl.pallas_call(
        kernel,
        out_shape=jax.ShapeDtypeStruct((m_pad, d_pad), orig_dtype),
        grid_spec=pltpu.PrefetchScalarGridSpec(
            num_scalar_prefetch=1,                       # dropout seed -> SMEM
            grid=(n_m_tiles, n_h_tiles),
            in_specs=[
                pl.BlockSpec((block_m, d_pad), lambda i, k, seed: (i, 0)),   # x tile
                pl.BlockSpec((d_pad, block_h), lambda i, k, seed: (0, k)),   # W1 k-tile
                pl.BlockSpec((1, block_h),     lambda i, k, seed: (0, k)),   # b1 k-tile
                pl.BlockSpec((block_h, d_pad), lambda i, k, seed: (k, 0)),   # W2 k-tile
                pl.BlockSpec((1, d_pad),       lambda i, k, seed: (0, 0)),   # b2
            ],
            out_specs=pl.BlockSpec((block_m, d_pad), lambda i, k, seed: (i, 0)),
            scratch_shapes=[pltpu.VMEM((block_m, d_pad), jnp.float32)],
        ),
        compiler_params=pltpu.CompilerParams(
            dimension_semantics=("parallel", "arbitrary"),
            vmem_limit_bytes=vmem_limit),
        cost_estimate=pl.CostEstimate(
            flops=flops, transcendentals=0, bytes_accessed=bytes_accessed),
    )(seed_arr, x2, w1p, b1p, w2p, b2p)

    out = out[:m, :d_model]
    return out.reshape(orig_shape[:-1] + (d_model,))


def _reference(x, w1, b1, w2, b2):
    """Pure-numpy re-implementation of the torch forward (dropout disabled)."""
    d_model = x.shape[-1]
    h = x.reshape(-1, d_model).astype(np.float32) @ w1 + b1
    y = np.maximum(h @ w2 + b2, 0.0)
    return y.reshape(x.shape[:-1] + (w2.shape[-1],)).astype(np.float32)


if __name__ == "__main__":
    batch, seq, d_model, ffn_hidden = 2, 8, 32, 64

    key = jax.random.PRNGKey(0)
    k_x, k_w1, k_b1, k_w2, k_b2 = jax.random.split(key, 5)
    x = jax.random.normal(k_x, (batch, seq, d_model), jnp.float32)
    w1 = jax.random.normal(k_w1, (d_model, ffn_hidden), jnp.float32) / np.sqrt(d_model)
    b1 = jax.random.normal(k_b1, (ffn_hidden,), jnp.float32) * 0.1
    w2 = jax.random.normal(k_w2, (ffn_hidden, d_model), jnp.float32) / np.sqrt(ffn_hidden)
    b2 = jax.random.normal(k_b2, (d_model,), jnp.float32) * 0.1

    # Deterministic path (dropout p = 0.0, i.e. eval mode): verify numerics.
    out = jax.block_until_ready(
        positionwise_feed_forward(x, w1, b1, w2, b2, drop_rate=0.0))
    ref = _reference(np.asarray(x), np.asarray(w1), np.asarray(b1),
                     np.asarray(w2), np.asarray(b2))
    # bf16 MXU accumulation -> 2e-2 tolerance (document per review).
    np.testing.assert_allclose(np.asarray(out), ref, rtol=2e-2, atol=2e-2)

    # Training path (dropout p = 0.1): exercise the in-kernel hash PRNG.
    out_drop = jax.block_until_ready(
        positionwise_feed_forward(x, w1, b1, w2, b2, drop_rate=0.1, seed=1234))
    assert out_drop.shape == x.shape
    assert bool(jnp.all(jnp.isfinite(out_drop)))
    assert bool(jnp.all(out_drop >= 0.0))     # ReLU is the last op

    print("KERNEL_OK")
</pallas_src>

<mosaic_0001>
module attributes {stable_mosaic.version = 11 : i64} {
  func.func @kernel(%arg0: i32, %arg1: i32, %arg2: memref<1xi32, #tpu.memory_space<smem>>, %arg3: memref<8x128xbf16, #tpu.memory_space<vmem>>, %arg4: memref<128x128xbf16, #tpu.memory_space<vmem>>, %arg5: memref<1x128xf32, #tpu.memory_space<vmem>>, %arg6: memref<128x128xbf16, #tpu.memory_space<vmem>>, %arg7: memref<1x128xf32, #tpu.memory_space<vmem>>, %arg8: memref<8x128xf32, #tpu.memory_space<vmem>>, %arg9: memref<8x128xf32, #tpu.memory_space<vmem>>) attributes {dimension_semantics = [#tpu.dimension_semantics<parallel>, #tpu.dimension_semantics<arbitrary>], iteration_bounds = array<i64: 2, 1>, scalar_prefetch = 1 : i64, scratch_operands = 1 : i64, tpu.core_type = #tpu.core_type<tc>, window_params = [{transform_indices = @transform_0, window_bounds = array<i64: 8, 128>}, {transform_indices = @transform_1, window_bounds = array<i64: 128, 128>}, {transform_indices = @transform_2, window_bounds = array<i64: 1, 128>}, {transform_indices = @transform_3, window_bounds = array<i64: 128, 128>}, {pipeline_mode = #tpu.pipeline_mode<synchronous>, transform_indices = @transform_4, window_bounds = array<i64: 1, 128>}, {transform_indices = @transform_5, window_bounds = array<i64: 8, 128>}]} {
    %c0_i32 = arith.constant 0 : i32
    %0 = arith.cmpi eq, %arg1, %c0_i32 : i32
    %1 = arith.extui %0 : i1 to i32
    %c0_i32_0 = arith.constant 0 : i32
    %2 = arith.cmpi ne, %1, %c0_i32_0 : i32
    scf.if %2 {
      %cst_15 = arith.constant 0.000000e+00 : f32
      %18 = vector.broadcast %cst_15 : f32 to vector<8x128xf32>
      %c0_16 = arith.constant 0 : index
      %c0_17 = arith.constant 0 : index
      %19 = vector.load %arg9[%c0_16, %c0_17] : memref<8x128xf32, #tpu.memory_space<vmem>>, vector<8x128xf32>
      tpu.vector_store %arg9[%c0_16, %c0_17], %18 {strides = array<i32>} : memref<8x128xf32, #tpu.memory_space<vmem>>, vector<8x128xf32>,
    } else {
    }
    %c0 = arith.constant 0 : index
    %c0_1 = arith.constant 0 : index
    %3 = vector.load %arg3[%c0, %c0_1] : memref<8x128xbf16, #tpu.memory_space<vmem>>, vector<8x128xbf16>
    %c0_2 = arith.constant 0 : index
    %c0_3 = arith.constant 0 : index
    %4 = vector.load %arg4[%c0_2, %c0_3] : memref<128x128xbf16, #tpu.memory_space<vmem>>, vector<128x128xbf16>
    %cst = arith.constant dense<0.000000e+00> : vector<8x128xf32>
    %5 = tpu.matmul %3, %4, %cst {dimension_numbers = #tpu.dot_dimension_numbers<[1], [0], [0], [1], [0, 0, 1, 1], [], []>} : vector<8x128xbf16>, vector<128x128xbf16>, vector<8x128xf32> -> vector<8x128xf32>
    %c0_4 = arith.constant 0 : index
    %c0_5 = arith.constant 0 : index
    %6 = vector.load %arg5[%c0_4, %c0_5] : memref<1x128xf32, #tpu.memory_space<vmem>>, vector<1x128xf32>
    %7 = vector.broadcast %6 : vector<1x128xf32> to vector<8x128xf32>
    %8 = arith.addf %5, %7 : vector<8x128xf32>
    %c0_6 = arith.constant 0 : index
    %c0_7 = arith.constant 0 : index
    %9 = vector.load %arg9[%c0_6, %c0_7] : memref<8x128xf32, #tpu.memory_space<vmem>>, vector<8x128xf32>
    %10 = arith.truncf %8 : vector<8x128xf32> to vector<8x128xbf16>
    %c0_8 = arith.constant 0 : index
    %c0_9 = arith.constant 0 : index
    %11 = vector.load %arg6[%c0_8, %c0_9] : memref<128x128xbf16, #tpu.memory_space<vmem>>, vector<128x128xbf16>
    %cst_10 = arith.constant dense<0.000000e+00> : vector<8x128xf32>
    %12 = tpu.matmul %10, %11, %cst_10 {dimension_numbers = #tpu.dot_dimension_numbers<[1], [0], [0], [1], [0, 0, 1, 1], [], []>} : vector<8x128xbf16>, vector<128x128xbf16>, vector<8x128xf32> -> vector<8x128xf32>
    %13 = arith.addf %9, %12 : vector<8x128xf32>
    %c0_11 = arith.constant 0 : index
    %c0_12 = arith.constant 0 : index
    %14 = vector.load %arg9[%c0_11, %c0_12] : memref<8x128xf32, #tpu.memory_space<vmem>>, vector<8x128xf32>
    tpu.vector_store %arg9[%c0_11, %c0_12], %13 {strides = array<i32>} : memref<8x128xf32, #tpu.memory_space<vmem>>, vector<8x128xf32>,
    %c0_i32_13 = arith.constant 0 : i32
    %15 = arith.cmpi eq, %arg1, %c0_i32_13 : i32
    %16 = arith.extui %15 : i1 to i32
    %c0_i32_14 = arith.constant 0 : i32
    %17 = arith.cmpi ne, %16, %c0_i32_14 : i32
    scf.if %17 {
      %c0_15 = arith.constant 0 : index
      %c0_16 = arith.constant 0 : index
      %18 = vector.load %arg9[%c0_15, %c0_16] : memref<8x128xf32, #tpu.memory_space<vmem>>, vector<8x128xf32>
      %c0_17 = arith.constant 0 : index
      %c0_18 = arith.constant 0 : index
      %19 = vector.load %arg7[%c0_17, %c0_18] : memref<1x128xf32, #tpu.memory_space<vmem>>, vector<1x128xf32>
      %20 = vector.broadcast %19 : vector<1x128xf32> to vector<8x128xf32>
      %21 = arith.addf %18, %20 : vector<8x128xf32>
      %cst_19 = arith.constant 0.000000e+00 : f32
      %22 = vector.broadcast %cst_19 : f32 to vector<8x128xf32>
      %23 = arith.maximumf %21, %22 : vector<8x128xf32>
      %c0_20 = arith.constant 0 : index
      %c0_21 = arith.constant 0 : index
      %24 = vector.load %arg8[%c0_20, %c0_21] : memref<8x128xf32, #tpu.memory_space<vmem>>, vector<8x128xf32>
      tpu.vector_store %arg8[%c0_20, %c0_21], %23 {strides = array<i32>} : memref<8x128xf32, #tpu.memory_space<vmem>>, vector<8x128xf32>,
    } else {
    }
    return
  }
  func.func @transform_0(%arg0: i32, %arg1: i32, %arg2: memref<1xi32, #tpu.memory_space<smem>>) -> (i32, i32) {
    %c0_i32 = arith.constant 0 : i32
    %c0_i32_0 = arith.constant 0 : i32
    return %arg0, %c0_i32 : i32, i32
  }
  func.func @transform_1(%arg0: i32, %arg1: i32, %arg2: memref<1xi32, #tpu.memory_space<smem>>) -> (i32, i32) {
    %c0_i32 = arith.constant 0 : i32
    %c0_i32_0 = arith.constant 0 : i32
    return %c0_i32, %arg1 : i32, i32
  }
  func.func @transform_2(%arg0: i32, %arg1: i32, %arg2: memref<1xi32, #tpu.memory_space<smem>>) -> (i32, i32) {
    %c0_i32 = arith.constant 0 : i32
    %c0_i32_0 = arith.constant 0 : i32
    return %c0_i32, %arg1 : i32, i32
  }
  func.func @transform_3(%arg0: i32, %arg1: i32, %arg2: memref<1xi32, #tpu.memory_space<smem>>) -> (i32, i32) {
    %c0_i32 = arith.constant 0 : i32
    %c0_i32_0 = arith.constant 0 : i32
    return %arg1, %c0_i32 : i32, i32
  }
  func.func @transform_4(%arg0: i32, %arg1: i32, %arg2: memref<1xi32, #tpu.memory_space<smem>>) -> (i32, i32) {
    %c0_i32 = arith.constant 0 : i32
    %c0_i32_0 = arith.constant 0 : i32
    %c0_i32_1 = arith.constant 0 : i32
    return %c0_i32, %c0_i32_0 : i32, i32
  }
  func.func @transform_5(%arg0: i32, %arg1: i32, %arg2: memref<1xi32, #tpu.memory_space<smem>>) -> (i32, i32) {
    %c0_i32 = arith.constant 0 : i32
    %c0_i32_0 = arith.constant 0 : i32
    return %arg0, %c0_i32 : i32, i32
  }
}

</mosaic_0001>

<bundles_post_ra>
// kernel: tpu_custom_call.1
= control target key start
LH: loop header
LB: loop body
LE: loop exit
PB: predicated region body
PF: predicated region fallthrough
CT: control target
= control target key end

     0   :  { %12 = vsyncpa [#allocation6], 0  ;;  %s1354_s0 = inlined_call_operand.<no memory space> [shape: s32[1], index: 0, kind: input, shape index: {}]   ;;  %s1355_s1 = inlined_call_operand.hbm [shape: bf16[16,128], index: 1, kind: input, shape index: {}]   ;;  %s1356_s2 = inlined_call_operand.hbm [shape: bf16[128,128], index: 2, kind: input, shape index: {}]   ;;  %s1357_s3 = inlined_call_operand.vmem [shape: f32[1,128], index: 3, kind: input, shape index: {}]   ;;  %s1358_s4 = inlined_call_operand.hbm [shape: bf16[128,128], index: 4, kind: input, shape index: {}]   ;;  %s1359_s5 = inlined_call_operand.vmem [shape: f32[1,128], index: 5, kind: input, shape index: {}]   ;;  %s1360_s6 = inlined_call_operand.hbm [shape: f32[16,128], index: 6, kind: output, shape index: {}]  }
   0x1   :  { %14 = vsyncpa [#allocation6 + $0x1], 0 }
   0x2   :  { %15 = vsyncpa [#allocation9], 0 }
   0x3   :  { %16 = vsyncpa [#allocation7], 0 }
   0x4   :  { %18 = vsyncpa [#allocation7 + $0x1], 0  ;;  %s1094_s0 = smov 0   ;;  %s1096_s21 = smov 0  }
   0x5   :  { %s1098_s22 = smov 0   ;;  %s1100_s23 = smov 0  }
   0x6   :  { %s1102_s24 = smov 0   ;;  %s1104_s25 = smov 0  }
   0x7 LB: > { %s680_s26 = sadd.s32 4294967295, %s1049_s25   ;;  %s681_s27 = sadd.s32 4294967294, %s1049_s25   ;;  %s1049_s25 = sphi %s1104_s25, %s24_s25   ;;  %s1045_s24 = sphi %s1102_s24, %s1382_s24   ;;  %s1041_s23 = sphi %s1100_s23, %s1381_s23   ;;  %s1037_s22 = sphi %s1098_s22, %s1380_s22   ;;  %s1033_s21 = sphi %s1096_s21, %s1379_s21   ;;  %s1029_s0 = sphi %s1094_s0, %s1378_s0  }
   0x8   : > { %p56_p0 = scmp.ne.s32.totalorder %s1033_s21, %s1029_s0  ;;  %p1128_p1 = scmp.eq.s32.totalorder %s680_s26, 0 }
   0x9   : > { %p1132_p2 = scmp.eq.s32.totalorder %s680_s26, 1  ;;  %p185_p3 = scmp.eq.s32.totalorder %s681_s27, 1 }
   0xa   : > { %s1365_s28 = scalar_select %p1128_p1, 1, 0 }
   0xb   : > { %p1138_p4 = por %p1128_p1, %p56_p0  ;;  %p682_p5 = scmp.ge.s32.totalorder %s1049_s25, 1 }
   0xc   : > { %p1143_p6 = por %p185_p3, %p56_p0  ;;  %p192_p7 = scmp.lt.s32.totalorder %s1049_s25, 3 }
   0xd   : > { %s1367_s30 = scalar_select %p1138_p4, 1, 0 }
   0xe   : > { %s1368_s7 = scalar_select %p1143_p6, 1, 0 }
   0xf   : > { %p1148_p8 = pnand %p682_p5, %p192_p7  ;;  %s1051_s9 = smov [#allocation8]  }
  0x10   : > { %s206_s10 = sshll.u32 %s1051_s9, 4  ;;  %s1052_s12 = smov [#allocation10]   ;;  %s1152_s10 = int_to_ptr.vmem [resolvable:$true] %s206_s10 }
  0x11   : > { %p786_p9 = pneg %p1148_p8  ;;  %s228_s13 = sshll.u32 %s1052_s12, 4  ;;  %s1163_s13 = int_to_ptr.vmem [resolvable:$true] %s228_s13 }
  0x12   : > { %s877_s16 = scalar_lea.hbm %s1356_s2, 1024 }
  0x13   : > { %p1159_p11 = pnand %p786_p9, %p1128_p1  ;;  %p878_p12 = scmp.ne.s32.totalorder %s1356_s2, %s877_s16 }
  0x14   : > { %p884_p5 = scmp.lt.u32.totalorder %s877_s16, %s1356_s2 }
  0x15   : > { %p879_p13 = pneg %p1159_p11 }
  0x17   : > { %p880_p0 = pnand %p879_p13, %p878_p12 }
  0x19   : > { %p881_p3 = pneg %p880_p0 }
  0x1b   : > { %p886_p7 = pnand %p884_p5, %p881_p3 }
  0x1d   : > { %889 = shalt.err (!%p886_p7)
}
  0x1e   : > { %s890_s26 = scalar_lea.vmem %s1152_s10, 1024  ;;  %p898_p1 = scmp.lt.s32.totalorder %s1152_s10, %s1152_s10 }
  0x1f   : > { %p891_p9 = scmp.ne.s32.totalorder %s1152_s10, %s890_s26  ;;  %p899_p12 = scmp.lt.s32.totalorder %s890_s26, %s890_s26 }
  0x21   : > { %p893_p10 = pnand %p891_p9, %p879_p13  ;;  %p900_p0 = por %p899_p12, %p898_p1 }
  0x23   : > { %p894_p6 = pneg %p893_p10 }
  0x25   : > { %p901_p4 = pnand %p900_p0, %p894_p6 }
  0x27   : > { %904 = shalt.err (!%p901_p4)
}
  0x28   : > { %s1053_s27 = smov 64   ;;  %s1054_s9 = smov 4  }
  0x29   : > { %789 = dma.hbm_to_vmem [thread:$0]  (!%p1159_p11), %s1356_s2, 1024, %s1152_s10, [#allocation9], %s1053_s27, %s1053_s27, %s1054_s9  }
  0x2a   : > { %s905_s17 = scalar_lea.hbm %s1358_s4, 1024 }
  0x2b   : > { %p906_p1 = scmp.ne.s32.totalorder %s1358_s4, %s905_s17  ;;  %p912_p10 = scmp.lt.u32.totalorder %s905_s17, %s1358_s4 }
  0x2d   : > { %p908_p4 = pnand %p906_p1, %p879_p13 }
  0x2f   : > { %p909_p6 = pneg %p908_p4 }
  0x31   : > { %p914_p3 = pnand %p912_p10, %p909_p6 }
  0x33   : > { %917 = shalt.err (!%p914_p3)
}
  0x34   : > { %s918_s10 = scalar_lea.vmem %s1163_s13, 1024  ;;  %p926_p12 = scmp.lt.s32.totalorder %s1163_s13, %s1163_s13 }
  0x35   : > { %p919_p5 = scmp.ne.s32.totalorder %s1163_s13, %s918_s10  ;;  %p927_p0 = scmp.lt.s32.totalorder %s918_s10, %s918_s10 }
  0x37   : > { %p921_p7 = pnand %p919_p5, %p879_p13  ;;  %p928_p1 = por %p927_p0, %p926_p12 }
  0x39   : > { %p922_p9 = pneg %p921_p7 }
  0x3b   : > { %p929_p4 = pnand %p928_p1, %p922_p9 }
  0x3d   : > { %932 = shalt.err (!%p929_p4)
}
  0x3e   : > { %792 = dma.hbm_to_vmem [thread:$0]  (!%p1159_p11), %s1358_s4, 1024, %s1163_s13, [#allocation9], %s1053_s27, %s1053_s27, %s1054_s9  }
  0x3f   : > { %s36_s15 = sadd.s32 1, %s1045_s24  ;;  %s43_s16 = sadd.s32 1, %s1037_s22 }
  0x40   : > { %p38_p13 = scmp.ge.s32.totalorder %s36_s15, 2  ;;  %p50_p6 = scmp.ne.s32.totalorder %s1037_s22, %s1033_s21 }
  0x41   : > { %p51_p10 = scmp.eq.s32.totalorder %s1049_s25, 0  ;;  %p803_p3 = scmp.lt.s32.totalorder %s1049_s25, 2 }
  0x42   : > { %s1384_s15 = smov (%p38_p13, %s36_s15), 0  ;;  %p1227_p7 = por %p1132_p2, %p50_p6 }
  0x43   : > { %p52_p5 = por %p51_p10, %p50_p6  ;;  %s40_s17 = ssub.s32 %s1045_s24, %s1384_s15 }
  0x44   : > { %s1371_s11 = scalar_select %p1227_p7, 1, 0 }
  0x45   : > { %s245_s18 = sand.u32 1, %s1037_s22   ;;  %p41_p9 = scmp.eq.s32.totalorder %s40_s17, 0 }
  0x46   : > { %s687_s13 = sshll.u32 %s245_s18, 2  ;;  %s688_s27 = sshll.u32 %s1045_s24, 6 }
  0x47   : > { %s1236_s9 = scalar_select %p41_p9, %s1037_s22, %s43_s16  }
  0x48   : > { %s1241_s26 = scalar_lea.hbm %s1355_s1, %s688_s27  ;;  %s249_s29 = scalar_lea.vmem [#allocation5], %s687_s13 }
  0x49   : > { %s256_s10 = sshll.u32 %s249_s29, 4  ;;  %p1245_p2 = pnand %p803_p3, %p52_p5  ;;  %s1249_s10 = int_to_ptr.vmem [resolvable:$true] %s256_s10 }
  0x4a   : > { %s246_s14 = scalar_lea.sflag [#allocation6], %s245_s18  ;;  %s933_s16 = scalar_lea.hbm %s1241_s26, 64 }
  0x4b   : > { %p934_p11 = scmp.ne.s32.totalorder %s1241_s26, %s933_s16  ;;  %p935_p12 = pneg %p1245_p2 }
  0x4c   : > { %s938_s27 = scalar_lea.hbm %s1355_s1, 128  ;;  %p939_p4 = scmp.lt.u32.totalorder %s1241_s26, %s1355_s1 }
  0x4d   : > { %p936_p0 = pnand %p935_p12, %p934_p11  ;;  %p940_p13 = scmp.lt.u32.totalorder %s938_s27, %s933_s16 }
  0x4e   : > { %p942_p10 = scmp.lt.u32.totalorder %s933_s16, %s1241_s26 }
  0x4f   : > { %p937_p1 = pneg %p936_p0  ;;  %p941_p6 = por %p940_p13, %p939_p4 }
  0x51   : > { %p943_p3 = por %p942_p10, %p941_p6 }
  0x53   : > { %p944_p5 = pnand %p943_p3, %p937_p1 }
  0x55   : > { %947 = shalt.err (!%p944_p5)
}
  0x56   : > { %s948_s18 = scalar_lea.vmem %s1249_s10, 64  ;;  %s1055_s29 = smov [#allocation5]  }
  0x57   : > { %p949_p9 = scmp.ne.s32.totalorder %s1249_s10, %s948_s18  ;;  %s953_s17 = sshll.u32 %s1055_s29, 4  ;;  %s954_s17 = int_to_ptr.vmem [resolvable:$false] %s953_s17 }
  0x58   : > { %s955_s13 = scalar_lea.vmem %s954_s17, 128  ;;  %p956_p7 = scmp.lt.s32.totalorder %s1249_s10, %s954_s17 }
  0x59   : > { %p951_p11 = pnand %p949_p9, %p935_p12  ;;  %p957_p4 = scmp.lt.s32.totalorder %s955_s13, %s948_s18 }
  0x5b   : > { %p952_p0 = pneg %p951_p11  ;;  %p958_p13 = por %p957_p4, %p956_p7 }
  0x5d   : > { %p959_p6 = pnand %p958_p13, %p952_p0 }
  0x5f   : > { %962 = shalt.err (!%p959_p6)
}
  0x60   : > { %796 = dma.hbm_to_vmem [thread:$0]  (!%p1245_p2), %s1241_s26, 64, %s1249_s10, %s246_s14  }
  0x61   : > { %265 = sbr.rel (%p1148_p8) target bundleno = 588 (0x24c), region = 40  ;;  %s1279_s16 = sand.u32 (!%p1148_p8), 1, %s1033_s21  }
  0x62   : > { %s690_s27 = sshll.u32 (!%p1148_p8), %s1279_s16, 2  ;;  %s268_s19 = scalar_lea.sflag (!%p1148_p8), [#allocation6], %s1279_s16 }
  0x63   : > { %s1283_s20 = scalar_lea.vmem (!%p1148_p8), [#allocation5], %s690_s27  ;;  %p1373_p7 = scmp.ne.s32.totalorder (!%p1148_p8), %s1367_s30, 0 }
  0x68   : > { %1016 = dma.done.wait (%p1373_p7), %s268_s19, 64  }
  0x69   : > { %1018 = vsyncadd (%p1373_p7), %s268_s19, 4294967232  ;;  %p1374_p2 = scmp.ne.s32.totalorder %s1365_s28, 0 }
  0x6b   : > { %1020 = dma.done.wait (%p1374_p2), [#allocation9], 2048  }
  0x6c   : > { %1022 = vsyncadd (%p1374_p2), [#allocation9], 4294965248  ;;  %v1056_v0 = vmov 0.0   ;;  %vm1057_vm0 = vmmov 0   ;;  %v861_v1 = vld [vmem:[#allocation8] sm:$0xff]   ;;  %v862_v2 = vld [vmem:[#allocation8 + $0x8] sm:$0xff]  }
  0x6d   : > { %734 = vmatprep.subr.bf16.mxu0 %v1056_v0  ;;  %750 = vmatprep.mubr.msk.bf16.mxu0 %vm1057_vm0, %v1056_v0  ;;  %v863_v3 = vld [vmem:[#allocation8 + $0x10] sm:$0xff]   ;;  %v869_v4 = vld [vmem:[#allocation10] sm:$0xff]   ;;  %v864_v5 = vld [vmem:[#allocation8 + $0x18] sm:$0xff]   ;;  %s693_s8 = sshll.u32 %s1279_s16, 3  ;;  %s713_s12 = sshll.u32 %s1041_s23, 7 }
  0x6e   : > { %754 = vmatprep.subr.bf16.mxu1 %v1056_v0  ;;  %770 = vmatprep.mubr.msk.bf16.mxu1 %vm1057_vm0, %v1056_v0  ;;  %v870_v6 = vld [vmem:[#allocation10 + $0x8] sm:$0xff]   ;;  %v865_v7 = vld [vmem:[#allocation8 + $0x20] sm:$0xff]   ;;  %v871_v8 = vld [vmem:[#allocation10 + $0x10] sm:$0xff]   ;;  %s308_s14 = scalar_lea.vmem [#allocation11], %s693_s8  ;;  %s1305_s13 = scalar_lea.hbm %s1360_s6, %s713_s12 }
  0x6f   : > { %735 = vmatpush3.bf16.msra.mxu0 %v861_v1  ;;  %755 = vmatpush3.bf16.msra.mxu1 %v869_v4  ;;  %v866_v9 = vld [vmem:[#allocation8 + $0x28] sm:$0xff]   ;;  %v872_v10 = vld [vmem:[#allocation10 + $0x18] sm:$0xff]   ;;  %v867_v11 = vld [vmem:[#allocation8 + $0x30] sm:$0xff]   ;;  %s567_s18 = sshll.u32 %s308_s14, 4  ;;  %s554_s27 = scalar_lea.sflag [#allocation7], %s1279_s16  ;;  %s1307_s18 = int_to_ptr.vmem [resolvable:$true] %s567_s18 }
  0x70   : > { %736 = vmatprep.subr.bf16.mxu0 %v1056_v0  ;;  %756 = vmatprep.subr.bf16.mxu1 %v1056_v0  ;;  %v873_v12 = vld [vmem:[#allocation10 + $0x20] sm:$0xff]   ;;  %v868_v13 = vld [vmem:[#allocation8 + $0x38] sm:$0xff]   ;;  %v874_v14 = vld [vmem:[#allocation10 + $0x28] sm:$0xff]   ;;  %s963_s23 = scalar_lea.vmem %s1307_s18, 128  ;;  %p1375_p12 = scmp.ne.s32.totalorder %s1371_s11, 0 }
  0x71   : > { %v319_v15 = vld [vmem:[%s1283_s20] sm:$0xf]  ;;  %v875_v16 = vld [vmem:[#allocation10 + $0x30] sm:$0xff]   ;;  %p964_p8 = scmp.ne.s32.totalorder %s1307_s18, %s963_s23  ;;  %s1058_s19 = smov [#allocation11]  }
  0x72   : > { %v876_v17 = vld [vmem:[#allocation10 + $0x38] sm:$0xff]   ;;  %s967_s20 = sshll.u32 %s1058_s19, 4  ;;  %s968_s20 = int_to_ptr.vmem [resolvable:$false] %s967_s20 }
  0x73   : > { %737 = vmatpush3.bf16.msra.mxu0 %v862_v2  ;;  %757 = vmatpush3.bf16.msra.mxu1 %v870_v6  ;;  %v694_v18 = vld [vmem:[%s1357_s3] ss:$0 sm:$0xff]  ;;  %p965_p1 = pnand %p964_p8, %p1375_p12  ;;  %s969_s28 = scalar_lea.vmem %s968_s20, 256 }
  0x74   : > { %738 = vmatprep.subr.bf16.mxu0 %v1056_v0  ;;  %758 = vmatprep.subr.bf16.mxu1 %v1056_v0  ;;  %v711_v25 = vld [vmem:[%s1359_s5] ss:$0 sm:$0xff]  ;;  %p970_p3 = scmp.lt.s32.totalorder %s1307_s18, %s968_s20  ;;  %p971_p5 = scmp.lt.s32.totalorder %s969_s28, %s963_s23 }
  0x75   : > { %p966_p10 = pneg %p965_p1 }
  0x76   : > { %p972_p9 = por %p971_p5, %p970_p3 }
  0x77   : > { %739 = vmatpush3.bf16.msra.mxu0 %v863_v3  ;;  %759 = vmatpush3.bf16.msra.mxu1 %v871_v8 }
  0x78   : > { %740 = vmatprep.subr.bf16.mxu0 %v1056_v0  ;;  %760 = vmatprep.subr.bf16.mxu1 %v1056_v0  ;;  %p973_p11 = pnand %p972_p9, %p966_p10 }
  0x7b   : > { %741 = vmatpush3.bf16.msra.mxu0 %v864_v5  ;;  %761 = vmatpush3.bf16.msra.mxu1 %v872_v10 }
  0x7c   : > { %742 = vmatprep.subr.bf16.mxu0 %v1056_v0  ;;  %762 = vmatprep.subr.bf16.mxu1 %v1056_v0 }
  0x7f   : > { %743 = vmatpush3.bf16.msra.mxu0 %v865_v7  ;;  %763 = vmatpush3.bf16.msra.mxu1 %v873_v12 }
  0x80   : > { %744 = vmatprep.subr.bf16.mxu0 %v1056_v0  ;;  %764 = vmatprep.subr.bf16.mxu1 %v1056_v0 }
  0x83   : > { %745 = vmatpush3.bf16.msra.mxu0 %v866_v9  ;;  %765 = vmatpush3.bf16.msra.mxu1 %v874_v14 }
  0x84   : > { %746 = vmatprep.subr.bf16.mxu0 %v1056_v0  ;;  %766 = vmatprep.subr.bf16.mxu1 %v1056_v0 }
  0x87   : > { %747 = vmatpush3.bf16.msra.mxu0 %v867_v11  ;;  %767 = vmatpush3.bf16.msra.mxu1 %v875_v16 }
  0x88   : > { %748 = vmatprep.subr.bf16.mxu0 %v1056_v0  ;;  %768 = vmatprep.subr.bf16.mxu1 %v1056_v0 }
  0x8b   : > { %749 = vmatpush3.bf16.msra.mxu0 %v868_v13  ;;  %769 = vmatpush3.bf16.msra.mxu1 %v876_v17 }
  0x8e   : > { %751 = vmatmul.mubr.bf16.vlgmr.msra.gmra.mrb[0].mxu0 %v319_v15 }
 0x161   : > { %v425_v19 = vpop.f32.mrb[0].mxu0 }
 0x162   : > { %v426_v20 = vadd.f32 %v694_v18, %v425_v19  ;;  %v752_v21 = vpop.f32.mrb[1].mxu0 }
 0x163   : > { %v428_v22 = vpop.f32.mrb[2].mxu0 }
 0x164   : > { %v432_v23 = vpack.c.bf16 %v426_v20, %v426_v20  ;;  %v753_v24 = vpop.f32.mrb[3].mxu0 }
 0x166   : > { %771 = vmatmul.mubr.bf16.vlgmr.msra.gmra.mrb[0].mxu1 %v432_v23 }
 0x239   : > { %v531_v26 = vpop.f32.mrb[0].mxu1 }
 0x23a   : > { %v550_v27 = vadd.f32 %v711_v25, %v531_v26  ;;  %v772_v28 = vpop.f32.mrb[1].mxu1 }
 0x23b   : > { %v534_v29 = vpop.f32.mrb[2].mxu1 }
 0x23c   : > { %v551_v30 = vmax.f32 %v550_v27, 0.0  ;;  %v773_v31 = vpop.f32.mrb[3].mxu1 }
 0x23e   : > { %552 = vst [vmem:[%s308_s14] sm:$0xff] %v551_v30 }
 0x23f   : > { %976 = shalt.err (!%p973_p11)
}
 0x240   : > { %s977_s16 = scalar_lea.hbm %s1305_s13, 128  ;;  %s981_s26 = scalar_lea.hbm %s1360_s6, 256 }
 0x241   : > { %p978_p0 = scmp.ne.s32.totalorder %s1305_s13, %s977_s16  ;;  %p982_p6 = scmp.lt.u32.totalorder %s1305_s13, %s1360_s6 }
 0x242   : > { %p983_p7 = scmp.lt.u32.totalorder %s981_s26, %s977_s16  ;;  %p985_p8 = scmp.lt.u32.totalorder %s977_s16, %s1305_s13 }
 0x243   : > { %p979_p4 = pnand %p978_p0, %p1375_p12 }
 0x244   : > { %p984_p2 = por %p983_p7, %p982_p6 }
 0x245   : > { %p980_p13 = pneg %p979_p4 }
 0x246   : > { %p986_p1 = por %p985_p8, %p984_p2 }
 0x248   : > { %p987_p10 = pnand %p986_p1, %p980_p13 }
 0x24a   : > { %990 = shalt.err (!%p987_p10)
}
 0x24b   : > { %784 = dma.vmem_to_hbm [thread:$0]  (%p1375_p12), %s1307_s18, 128, %s1305_s13, %s554_s27  }
 0x24c PF: > { %s579_s14 = sand.u32 1, %s1029_s0   ;;  %p1376_p3 = scmp.ne.s32.totalorder %s1368_s7, 0 }
 0x24d   : > { %p1377_p5 = scmp.ge.s32.totalorder %s1049_s25, 2  ;;  %s580_s29 = scalar_lea.sflag [#allocation7], %s579_s14 }
 0x24f   : > { %p798_p9 = pnand %p1377_p5, %p1376_p3 }
 0x251   : > { %1024 = dma.done.wait (!%p798_p9), %s580_s29, 128  }
 0x252   : > { %1026 = vsyncadd (!%p798_p9), %s580_s29, 4294967168  ;;  %s24_s25 = sadd.s32 1, %s1049_s25   ;;  %s1378_s0 = smov %s1033_s21 }
 0x253   : > { %p21_p11 = scmp.ge.s32.totalorder %s24_s25, 4   ;;  %s1379_s21 = smov %s1037_s22 }
 0x254   : > { %s1380_s22 = smov %s1236_s9  ;;  %s1381_s23 = smov %s1045_s24 }
 0x255   : > { %s1382_s24 = smov %s1384_s15  ;;  %23 = sbr.rel (!%p21_p11) target bundleno = 7 (0x7), region = 106 }
 0x25c   :  { %585 = vsyncpa [#allocation6], 1 }
 0x25d   :  { %587 = vsyncpa [#allocation6 + $0x1], 1 }
 0x25e   :  { %588 = vsyncpa [#allocation9], 1 }
 0x25f   :  { %589 = vsyncpa [#allocation7], 1 }
 0x260   :  { %591 = vsyncpa [#allocation7 + $0x1], 1 }

</bundles_post_ra>
